<compile_context>
chip_gen: v5e
topology: v5e:2x2
jax: 0.10.0
libtpu: 0.0.40
codegen_flags: <defaults>
</compile_context>

<pallas_src>
import functools

import jax
import jax.numpy as jnp
from jax.experimental import pallas as pl
from jax.experimental.pallas import tpu as pltpu


def _gcn_block_kernel(a_ref, w_ref, b_ref, x_ref, out_ref, *, agg_first):
    """One grid step = tb graphs: two MXU matmuls + one f32 bias add (no loop)."""
    bias = b_ref[...].astype(jnp.float32)                              # (1, O) f32
    if agg_first:
        # (A_blk @ x) @ W -- cheaper aggregation when input_dim < output_dim.
        agg = jnp.dot(a_ref[...], x_ref[...], preferred_element_type=jnp.float32)
        y = jnp.dot(agg.astype(w_ref.dtype), w_ref[...],
                    preferred_element_type=jnp.float32)
    else:
        # A_blk @ (x @ W) -- cheaper aggregation when output_dim <= input_dim.
        h = jnp.dot(x_ref[...], w_ref[...], preferred_element_type=jnp.float32)
        y = jnp.dot(a_ref[...], h.astype(a_ref.dtype),
                    preferred_element_type=jnp.float32)
    out_ref[...] = (y + bias).astype(out_ref.dtype)                    # one VPU add/block


def _ceil_to(v, m):
    return -(-v // m) * m


def _sublane(dtype):
    # Packed-sublane alignment: 8 for 4-byte, 16 for 2-byte, 32 for 1-byte dtypes.
    return max(8, 32 // jnp.dtype(dtype).itemsize)


def _pick_graphs_per_block(b_size, graph_size, input_dim, output_dim,
                           in_isz, out_isz, sublane, budget_bytes):
    """Best tb (divisor of b_size) under a lane/sublane-padding-aware VMEM budget.

    Preference: rows >= 128 (MXU-native aggregation), >= 8 grid steps (>=4 pipelined
    steps per TensorCore on v7x), >= 2 steps (any DMA/compute overlap), rows up to ~512
    (amortize grid overhead while bounding the rows^2 block-diag A), then more steps.
    """
    i_pad = _ceil_to(input_dim, 128)
    o_pad = _ceil_to(output_dim, 128)
    best, best_score = None, None
    for tb in range(1, b_size + 1):
        if b_size % tb:
            continue
        rows = tb * graph_size
        if rows % sublane and tb != b_size:
            continue                      # illegal BlockSpec row count for this dtype
        rows_pad = _ceil_to(rows, sublane)
        # Double-buffered x/out tiles + single-buffered A_blk / W / f32-bias constants.
        tile_bytes = 2 * rows_pad * (i_pad * in_isz + o_pad * out_isz)
        const_bytes = (rows_pad * _ceil_to(rows, 128) * in_isz
                       + _ceil_to(input_dim, sublane) * o_pad * in_isz
                       + 8 * o_pad * 4)
        if tile_bytes + const_bytes > budget_bytes:
            continue
        n_blocks = b_size // tb
        score = (rows >= 128, n_blocks >= 8, n_blocks >= 2, min(rows, 512), n_blocks)
        if best_score is None or score > best_score:
            best, best_score = tb, score
    if best is not None:
        return best
    # Nothing fit the budget: smallest spec-legal tb (vmem_limit still covers it).
    for tb in range(1, b_size + 1):
        if b_size % tb == 0 and (tb * graph_size) % sublane == 0:
            return tb
    return b_size


def gcn_conv(adj, x, weight, bias, b_size, graph_size, *,
             graphs_per_block=None, compute_dtype=None):
    """Pallas implementation of GCN_conv.forward(adj, x, b_size, graph_size)."""
    n_nodes, input_dim = x.shape
    output_dim = weight.shape[1]
    assert n_nodes == b_size * graph_size

    out_dtype = x.dtype

    # bf16 operands (f32 accumulation) are the recommended default on v6e/v7x: the
    # kernel is HBM-bound at these feature dims, so halving x/out traffic ~doubles
    # throughput.  Folding 1/(1+deg) into a bf16 A_norm loses a little precision for
    # very dense graphs -- pass compute_dtype=jnp.float32 when that matters.
    if compute_dtype is None:
        try:
            kind = jax.devices()[0].device_kind.lower().replace(" ", "")
            prefer_bf16 = ("v6" in kind) or ("v7" in kind) or ("tpu7" in kind)
        except Exception:
            prefer_bf16 = False
        cdt = jnp.dtype(jnp.bfloat16) if prefer_bf16 else jnp.dtype(x.dtype)
    else:
        cdt = jnp.dtype(compute_dtype)

    if bias is None:  # use_bias=False
        bias = jnp.zeros((output_dim,), dtype=jnp.float32)

    # Fold self connection + degree normalization into the adjacency once (f32):
    #   A_norm = (adj + I) / (1 + adj.sum(axis=1))[:, None]
    adj_f32 = adj.astype(jnp.float32)
    deg_inv = 1.0 / (1.0 + jnp.sum(adj_f32, axis=1, keepdims=True))
    a_norm = (adj_f32 + jnp.eye(graph_size, dtype=jnp.float32)) * deg_inv

    in_isz = cdt.itemsize
    out_isz = jnp.dtype(out_dtype).itemsize
    sub = _sublane(cdt)

    # Physical-VMEM-aware budget: stay well under the smallest per-core VMEM we may
    # target (v7x: 64 MiB).
    try:
        phys_vmem = int(pltpu.get_tpu_info().vmem_capacity_bytes)
    except Exception:
        phys_vmem = 64 << 20
    budget = max(min(phys_vmem - (24 << 20), 40 << 20), 8 << 20)

    tb = graphs_per_block or _pick_graphs_per_block(
        b_size, graph_size, input_dim, output_dim, in_isz, out_isz, sub, budget)
    assert b_size % tb == 0
    rows = tb * graph_size
    n_blocks = b_size // tb

    # Block-diagonal normalized adjacency: ONE matmul aggregates all tb graphs of a block.
    a_block = jnp.kron(jnp.eye(tb, dtype=jnp.float32), a_norm).astype(cdt)
    x_c = x.astype(cdt)
    w_c = weight.astype(cdt)
    bias2d = bias.reshape(1, output_dim).astype(jnp.float32)   # bias add stays f32

    # Aggregate-then-transform (associativity) when it shrinks the aggregation width.
    agg_first = input_dim < output_dim

    # Padding-aware VMEM request, capped under the physical per-core VMEM.
    rows_pad = _ceil_to(rows, sub)
    i_pad = _ceil_to(input_dim, 128)
    o_pad = _ceil_to(output_dim, 128)
    tile_bytes = 2 * rows_pad * (i_pad * in_isz + o_pad * out_isz)
    const_bytes = (rows_pad * _ceil_to(rows, 128) * in_isz
                   + _ceil_to(input_dim, sub) * o_pad * in_isz
                   + 8 * o_pad * 4)
    vmem_needed = tile_bytes + 2 * const_bytes       # x2 tolerates double-buffer fallback
    vmem_limit = int(min(max(vmem_needed + (4 << 20), 16 << 20),
                         max(phys_vmem - (16 << 20), 16 << 20)))

    # Advisory cost for XLA's scheduler (physical FLOPs of the block-diag form).
    if agg_first:
        flops = (2 * n_blocks * rows * rows * input_dim
                 + 2 * n_nodes * input_dim * output_dim)
    else:
        flops = (2 * n_nodes * input_dim * output_dim
                 + 2 * n_blocks * rows * rows * output_dim)
    bytes_accessed = ((x_c.size + a_block.size + w_c.size) * in_isz
                      + bias2d.size * 4 + n_nodes * output_dim * out_isz)
    cost = pl.CostEstimate(flops=flops, transcendentals=0, bytes_accessed=bytes_accessed)

    kernel = functools.partial(_gcn_block_kernel, agg_first=agg_first)

    def build(single_buffer_constants):
        const_kw = ({"pipeline_mode": pl.Buffered(1)} if single_buffer_constants else {})
        return pl.pallas_call(
            kernel,
            out_shape=jax.ShapeDtypeStruct((n_nodes, output_dim), out_dtype),
            grid_spec=pltpu.PrefetchScalarGridSpec(
                num_scalar_prefetch=0,
                grid=(n_blocks,),
                in_specs=[
                    # Grid-invariant operands: constant index_map keeps them resident and
                    # elides re-fetch; Buffered(1) reclaims the second buffer.
                    pl.BlockSpec((rows, rows), lambda i: (0, 0), **const_kw),             # A_blk
                    pl.BlockSpec((input_dim, output_dim), lambda i: (0, 0), **const_kw),  # W
                    pl.BlockSpec((1, output_dim), lambda i: (0, 0), **const_kw),          # bias
                    # Pipelined per-step tile: tb graphs' worth of node rows.
                    pl.BlockSpec((rows, input_dim), lambda i: (i, 0)),                    # x
                ],
                out_specs=pl.BlockSpec((rows, output_dim), lambda i: (i, 0)),
            ),
            compiler_params=pltpu.CompilerParams(
                dimension_semantics=("parallel",),
                vmem_limit_bytes=vmem_limit,
            ),
            cost_estimate=cost,
        )

    args = (a_block, w_c, bias2d, x_c)
    try:
        return build(True)(*args)
    except Exception:
        # TODO(synk): some JAX builds reject pl.Buffered(1) on input specs; fall back to
        # the default double-buffered (still constant-index) specs.
        return build(False)(*args)


def gcn_conv_ref(adj, x, weight, bias, b_size, graph_size):
    """Pure-JAX reference mirroring the PyTorch loop exactly."""
    h = x @ weight
    deg = 1.0 + jnp.sum(adj, axis=1)
    out = jnp.zeros((x.shape[0], weight.shape[1]), x.dtype)
    accum = 0
    for _ in range(b_size):
        h_i = h[accum:accum + graph_size]
        y_i = (adj @ h_i + h_i) / deg.reshape(-1, 1)
        out = out.at[accum:accum + graph_size].set(y_i)
        accum += graph_size
    return out + bias


if __name__ == "__main__":
    # Small deterministic problem (output_dim = 128 -> lane-dense stores).
    b_size, graph_size = 8, 16
    input_dim, output_dim = 32, 128
    n_nodes = b_size * graph_size

    key = jax.random.PRNGKey(0)
    k_adj, k_x, k_w, k_b = jax.random.split(key, 4)

    # Symmetric 0/1 adjacency without self loops (typical GCN input).
    a = (jax.random.uniform(k_adj, (graph_size, graph_size)) > 0.5).astype(jnp.float32)
    adj = jnp.triu(a, 1)
    adj = adj + adj.T

    x = jax.random.normal(k_x, (n_nodes, input_dim), dtype=jnp.float32)

    # kaiming_uniform_-style synthetic init: fan_in = output_dim as in the module.
    bound = float(jnp.sqrt(6.0 / output_dim))
    weight = jax.random.uniform(
        k_w, (input_dim, output_dim), minval=-bound, maxval=bound, dtype=jnp.float32)
    # Module inits bias to zero; use a small nonzero bias so the add is exercised.
    bias = 0.1 * jax.random.normal(k_b, (output_dim,), dtype=jnp.float32)

    ref = gcn_conv_ref(adj, x, weight, bias, b_size, graph_size)

    # Full-precision path: tight check against the reference.
    out_f32 = jax.block_until_ready(
        gcn_conv(adj, x, weight, bias, b_size, graph_size, compute_dtype=jnp.float32))
    assert out_f32.shape == (n_nodes, output_dim)
    assert jnp.allclose(out_f32, ref, atol=1e-4, rtol=1e-4)

    # Default path (bf16 operands with f32 accumulation on v6e/v7x, f32 elsewhere).
    out_def = jax.block_until_ready(gcn_conv(adj, x, weight, bias, b_size, graph_size))
    assert out_def.dtype == x.dtype
    assert jnp.allclose(out_def, ref, atol=5e-2, rtol=5e-2)

    # Explicit bf16 path exercises the half-traffic mode on every chip.
    out_bf16 = jax.block_until_ready(
        gcn_conv(adj, x, weight, bias, b_size, graph_size, compute_dtype=jnp.bfloat16))
    assert out_bf16.dtype == x.dtype
    assert jnp.allclose(out_bf16, ref, atol=5e-2, rtol=5e-2)

    print("KERNEL_OK")
</pallas_src>

<mosaic_0001>
module attributes {stable_mosaic.version = 11 : i64} {
  func.func @_gcn_block_kernel(%arg0: i32, %arg1: memref<128x128xf32, #tpu.memory_space<vmem>>, %arg2: memref<32x128xf32, #tpu.memory_space<vmem>>, %arg3: memref<1x128xf32, #tpu.memory_space<vmem>>, %arg4: memref<128x32xf32, #tpu.memory_space<vmem>>, %arg5: memref<128x128xf32, #tpu.memory_space<vmem>>) attributes {dimension_semantics = [#tpu.dimension_semantics<parallel>], iteration_bounds = array<i64: 1>, scalar_prefetch = 0 : i64, scratch_operands = 0 : i64, tpu.core_type = #tpu.core_type<tc>, window_params = [{pipeline_mode = #tpu.pipeline_mode<synchronous>, transform_indices = @transform_0, window_bounds = array<i64: 128, 128>}, {pipeline_mode = #tpu.pipeline_mode<synchronous>, transform_indices = @transform_1, window_bounds = array<i64: 32, 128>}, {pipeline_mode = #tpu.pipeline_mode<synchronous>, transform_indices = @transform_2, window_bounds = array<i64: 1, 128>}, {transform_indices = @transform_3, window_bounds = array<i64: 128, 32>}, {transform_indices = @transform_4, window_bounds = array<i64: 128, 128>}]} {
    %c0 = arith.constant 0 : index
    %c0_0 = arith.constant 0 : index
    %0 = vector.load %arg3[%c0, %c0_0] : memref<1x128xf32, #tpu.memory_space<vmem>>, vector<1x128xf32>
    %c0_1 = arith.constant 0 : index
    %c0_2 = arith.constant 0 : index
    %1 = vector.load %arg1[%c0_1, %c0_2] : memref<128x128xf32, #tpu.memory_space<vmem>>, vector<128x128xf32>
    %c0_3 = arith.constant 0 : index
    %c0_4 = arith.constant 0 : index
    %2 = vector.load %arg4[%c0_3, %c0_4] : memref<128x32xf32, #tpu.memory_space<vmem>>, vector<128x32xf32>
    %cst = arith.constant dense<0.000000e+00> : vector<128x32xf32>
    %3 = tpu.matmul %1, %2, %cst {dimension_numbers = #tpu.dot_dimension_numbers<[1], [0], [0], [1], [0, 0, 1, 1], [], []>} : vector<128x128xf32>, vector<128x32xf32>, vector<128x32xf32> -> vector<128x32xf32>
    %c0_5 = arith.constant 0 : index
    %c0_6 = arith.constant 0 : index
    %4 = vector.load %arg2[%c0_5, %c0_6] : memref<32x128xf32, #tpu.memory_space<vmem>>, vector<32x128xf32>
    %cst_7 = arith.constant dense<0.000000e+00> : vector<128x128xf32>
    %5 = tpu.matmul %3, %4, %cst_7 {dimension_numbers = #tpu.dot_dimension_numbers<[1], [0], [0], [1], [0, 0, 1, 1], [], []>} : vector<128x32xf32>, vector<32x128xf32>, vector<128x128xf32> -> vector<128x128xf32>
    %6 = vector.broadcast %0 : vector<1x128xf32> to vector<128x128xf32>
    %7 = arith.addf %5, %6 : vector<128x128xf32>
    %c0_8 = arith.constant 0 : index
    %c0_9 = arith.constant 0 : index
    %8 = vector.load %arg5[%c0_8, %c0_9] : memref<128x128xf32, #tpu.memory_space<vmem>>, vector<128x128xf32>
    tpu.vector_store %arg5[%c0_8, %c0_9], %7 {strides = array<i32>} : memref<128x128xf32, #tpu.memory_space<vmem>>, vector<128x128xf32>,
    return
  }
  func.func @transform_0(%arg0: i32) -> (i32, i32) {
    %c0_i32 = arith.constant 0 : i32
    %c0_i32_0 = arith.constant 0 : i32
    %c0_i32_1 = arith.constant 0 : i32
    return %c0_i32, %c0_i32_0 : i32, i32
  }
  func.func @transform_1(%arg0: i32) -> (i32, i32) {
    %c0_i32 = arith.constant 0 : i32
    %c0_i32_0 = arith.constant 0 : i32
    %c0_i32_1 = arith.constant 0 : i32
    return %c0_i32, %c0_i32_0 : i32, i32
  }
  func.func @transform_2(%arg0: i32) -> (i32, i32) {
    %c0_i32 = arith.constant 0 : i32
    %c0_i32_0 = arith.constant 0 : i32
    %c0_i32_1 = arith.constant 0 : i32
    return %c0_i32, %c0_i32_0 : i32, i32
  }
  func.func @transform_3(%arg0: i32) -> (i32, i32) {
    %c0_i32 = arith.constant 0 : i32
    %c0_i32_0 = arith.constant 0 : i32
    return %arg0, %c0_i32 : i32, i32
  }
  func.func @transform_4(%arg0: i32) -> (i32, i32) {
    %c0_i32 = arith.constant 0 : i32
    %c0_i32_0 = arith.constant 0 : i32
    return %arg0, %c0_i32 : i32, i32
  }
}

module attributes {stable_mosaic.version = 11 : i64} {
  func.func @_gcn_block_kernel(%arg0: i32, %arg1: memref<128x128xf32, #tpu.memory_space<vmem>>, %arg2: memref<32x128xf32, #tpu.memory_space<vmem>>, %arg3: memref<1x128xf32, #tpu.memory_space<vmem>>, %arg4: memref<128x32xf32, #tpu.memory_space<vmem>>, %arg5: memref<128x128xf32, #tpu.memory_space<vmem>>) attributes {dimension_semantics = [#tpu.dimension_semantics<parallel>], iteration_bounds = array<i64: 1>, scalar_prefetch = 0 : i64, scratch_operands = 0 : i64, tpu.core_type = #tpu.core_type<tc>, window_params = [{pipeline_mode = #tpu.pipeline_mode<synchronous>, transform_indices = @transform_0, window_bounds = array<i64: 128, 128>}, {pipeline_mode = #tpu.pipeline_mode<synchronous>, transform_indices = @transform_1, window_bounds = array<i64: 32, 128>}, {pipeline_mode = #tpu.pipeline_mode<synchronous>, transform_indices = @transform_2, window_bounds = array<i64: 1, 128>}, {transform_indices = @transform_3, window_bounds = array<i64: 128, 32>}, {transform_indices = @transform_4, window_bounds = array<i64: 128, 128>}]} {
    %c0 = arith.constant 0 : index
    %c0_0 = arith.constant 0 : index
    %0 = vector.load %arg3[%c0, %c0_0] : memref<1x128xf32, #tpu.memory_space<vmem>>, vector<1x128xf32>
    %c0_1 = arith.constant 0 : index
    %c0_2 = arith.constant 0 : index
    %1 = vector.load %arg1[%c0_1, %c0_2] : memref<128x128xf32, #tpu.memory_space<vmem>>, vector<128x128xf32>
    %c0_3 = arith.constant 0 : index
    %c0_4 = arith.constant 0 : index
    %2 = vector.load %arg4[%c0_3, %c0_4] : memref<128x32xf32, #tpu.memory_space<vmem>>, vector<128x32xf32>
    %cst = arith.constant dense<0.000000e+00> : vector<128x32xf32>
    %3 = tpu.matmul %1, %2, %cst {dimension_numbers = #tpu.dot_dimension_numbers<[1], [0], [0], [1], [0, 0, 1, 1], [], []>} : vector<128x128xf32>, vector<128x32xf32>, vector<128x32xf32> -> vector<128x32xf32>
    %c0_5 = arith.constant 0 : index
    %c0_6 = arith.constant 0 : index
    %4 = vector.load %arg2[%c0_5, %c0_6] : memref<32x128xf32, #tpu.memory_space<vmem>>, vector<32x128xf32>
    %cst_7 = arith.constant dense<0.000000e+00> : vector<128x128xf32>
    %5 = tpu.matmul %3, %4, %cst_7 {dimension_numbers = #tpu.dot_dimension_numbers<[1], [0], [0], [1], [0, 0, 1, 1], [], []>} : vector<128x32xf32>, vector<32x128xf32>, vector<128x128xf32> -> vector<128x128xf32>
    %6 = vector.broadcast %0 : vector<1x128xf32> to vector<128x128xf32>
    %7 = arith.addf %5, %6 : vector<128x128xf32>
    %c0_8 = arith.constant 0 : index
    %c0_9 = arith.constant 0 : index
    %8 = vector.load %arg5[%c0_8, %c0_9] : memref<128x128xf32, #tpu.memory_space<vmem>>, vector<128x128xf32>
    tpu.vector_store %arg5[%c0_8, %c0_9], %7 {strides = array<i32>} : memref<128x128xf32, #tpu.memory_space<vmem>>, vector<128x128xf32>,
    return
  }
  func.func @transform_0(%arg0: i32) -> (i32, i32) {
    %c0_i32 = arith.constant 0 : i32
    %c0_i32_0 = arith.constant 0 : i32
    %c0_i32_1 = arith.constant 0 : i32
    return %c0_i32, %c0_i32_0 : i32, i32
  }
  func.func @transform_1(%arg0: i32) -> (i32, i32) {
    %c0_i32 = arith.constant 0 : i32
    %c0_i32_0 = arith.constant 0 : i32
    %c0_i32_1 = arith.constant 0 : i32
    return %c0_i32, %c0_i32_0 : i32, i32
  }
  func.func @transform_2(%arg0: i32) -> (i32, i32) {
    %c0_i32 = arith.constant 0 : i32
    %c0_i32_0 = arith.constant 0 : i32
    %c0_i32_1 = arith.constant 0 : i32
    return %c0_i32, %c0_i32_0 : i32, i32
  }
  func.func @transform_3(%arg0: i32) -> (i32, i32) {
    %c0_i32 = arith.constant 0 : i32
    %c0_i32_0 = arith.constant 0 : i32
    return %arg0, %c0_i32 : i32, i32
  }
  func.func @transform_4(%arg0: i32) -> (i32, i32) {
    %c0_i32 = arith.constant 0 : i32
    %c0_i32_0 = arith.constant 0 : i32
    return %arg0, %c0_i32 : i32, i32
  }
}

</mosaic_0001>

<bundles_post_ra>
// kernel: tpu_custom_call.1
= control target key start
LH: loop header
LB: loop body
LE: loop exit
PB: predicated region body
PF: predicated region fallthrough
CT: control target
= control target key end

     0   :  { %s511_s0 = inlined_call_operand.vmem [shape: f32[128,128], index: 0, kind: input, shape index: {}]   ;;  %s512_s1 = inlined_call_operand.vmem [shape: f32[32,128], index: 1, kind: input, shape index: {}]   ;;  %s513_s2 = inlined_call_operand.vmem [shape: f32[1,128], index: 2, kind: input, shape index: {}]   ;;  %s514_s3 = inlined_call_operand.vmem [shape: f32[128,32], index: 3, kind: input, shape index: {}]   ;;  %s515_s4 = inlined_call_operand.hbm [shape: f32[128,128], index: 4, kind: output, shape index: {}]  }
   0x1   :  { %v50_v0 = vld [vmem:[%s514_s3 + $0x78] sm:$0xff]  ;;  %v49_v1 = vld [vmem:[%s514_s3 + $0x70] sm:$0xff]  ;;  %v48_v2 = vld [vmem:[%s514_s3 + $0x68] sm:$0xff] }
   0x2   :  { %51 = vmatpush.msra.mxu0 %v50_v0  ;;  %287 = vmatpush.msra.mxu2 %v50_v0  ;;  %v47_v3 = vld [vmem:[%s514_s3 + $0x60] sm:$0xff]  ;;  %v46_v4 = vld [vmem:[%s514_s3 + $0x58] sm:$0xff] }
   0x3   :  { %288 = vmatpush.msra.mxu3 %v50_v0 }
   0x4   :  { %52 = vmatpush.msra.mxu0 %v49_v1  ;;  %289 = vmatpush.msra.mxu2 %v49_v1 }
   0x5   :  { %290 = vmatpush.msra.mxu3 %v49_v1 }
   0x6   :  { %53 = vmatpush.msra.mxu0 %v48_v2  ;;  %291 = vmatpush.msra.mxu2 %v48_v2 }
   0x7   :  { %292 = vmatpush.msra.mxu3 %v48_v2 }
   0x8   :  { %9 = vsyncpa [#allocation3], 0  ;;  %54 = vmatpush.msra.mxu0 %v47_v3  ;;  %293 = vmatpush.msra.mxu2 %v47_v3  ;;  %v45_v5 = vld [vmem:[%s514_s3 + $0x50] sm:$0xff]  ;;  %v44_v6 = vld [vmem:[%s514_s3 + $0x48] sm:$0xff]  ;;  %vm123_vm0 = vcmask 261120   ;;  %s259_s10 = sshll.u32 %s515_s4, 4  ;;  %s260_s10 = int_to_ptr.hbm [resolvable:$true] %s259_s10 }
   0x9   :  { %294 = vmatpush.msra.mxu3 %v47_v3  ;;  %v43_v7 = vld [vmem:[%s514_s3 + $0x40] sm:$0xff]  ;;  %v42_v8 = vld [vmem:[%s514_s3 + $0x38] sm:$0xff]  ;;  %v41_v9 = vld [vmem:[%s514_s3 + $0x30] sm:$0xff]  ;;  %s354_s11 = smov 128   ;;  %s355_s12 = smov 8  }
   0xa   :  { %55 = vmatpush.msra.mxu0 %v46_v4  ;;  %295 = vmatpush.msra.mxu2 %v46_v4  ;;  %v40_v10 = vld [vmem:[%s514_s3 + $0x28] sm:$0xff]  ;;  %v39_v11 = vld [vmem:[%s514_s3 + $0x20] sm:$0xff]  ;;  %v38_v12 = vld [vmem:[%s514_s3 + $0x18] sm:$0xff] }
   0xb   :  { %296 = vmatpush.msra.mxu3 %v46_v4  ;;  %v37_v13 = vld [vmem:[%s514_s3 + $0x10] sm:$0xff]  ;;  %v36_v14 = vld [vmem:[%s514_s3 + $0x8] sm:$0xff]  ;;  %v35_v15 = vld [vmem:[%s514_s3] sm:$0xff] }
   0xc   :  { %56 = vmatpush.msra.mxu0 %v45_v5  ;;  %297 = vmatpush.msra.mxu2 %v45_v5  ;;  %v19_v16 = vld [vmem:[%s511_s0] sm:$0xff]  ;;  %v26_v17 = vld [vmem:[%s511_s0 + $0x38] sm:$0xff]  ;;  %v20_v18 = vld [vmem:[%s511_s0 + $0x8] sm:$0xff] }
   0xd   :  { %298 = vmatpush.msra.mxu3 %v45_v5  ;;  %v27_v19 = vld [vmem:[%s511_s0 + $0x40] sm:$0xff]  ;;  %v21_v20 = vld [vmem:[%s511_s0 + $0x10] sm:$0xff]  ;;  %v28_v21 = vld [vmem:[%s511_s0 + $0x48] sm:$0xff] }
   0xe   :  { %57 = vmatpush.msra.mxu0 %v44_v6  ;;  %299 = vmatpush.msra.mxu2 %v44_v6  ;;  %v22_v22 = vld [vmem:[%s511_s0 + $0x18] sm:$0xff]  ;;  %v29_v23 = vld [vmem:[%s511_s0 + $0x50] sm:$0xff]  ;;  %v117_v27 = vld [vmem:[%s512_s1 + $0x8] sm:$0xff] }
   0xf   :  { %300 = vmatpush.msra.mxu3 %v44_v6  ;;  %v34_v24 = vld [vmem:[%s511_s0 + $0x78] sm:$0xff]  ;;  %v118_v26 = vld [vmem:[%s512_s1 + $0x10] sm:$0xff]  ;;  %v23_v28 = vld [vmem:[%s511_s0 + $0x20] sm:$0xff] }
  0x10   :  { %58 = vmatpush.msra.mxu0 %v43_v7  ;;  %301 = vmatpush.msra.mxu2 %v43_v7  ;;  %v119_v25 = vld [vmem:[%s512_s1 + $0x18] sm:$0xff]  ;;  %v24_v30 = vld [vmem:[%s511_s0 + $0x28] sm:$0xff]  ;;  %v31_v31 = vld [vmem:[%s511_s0 + $0x60] sm:$0xff] }
  0x11   :  { %302 = vmatpush.msra.mxu3 %v43_v7  ;;  %184 = vmatpush.msra.mxu1 %v119_v25  ;;  %v30_v29 = vld [vmem:[%s511_s0 + $0x58] sm:$0xff]  ;;  %v25_v32 = vld [vmem:[%s511_s0 + $0x30] sm:$0xff]  ;;  %v32_v33 = vld [vmem:[%s511_s0 + $0x68] sm:$0xff] }
  0x12   :  { %59 = vmatpush.msra.mxu0 %v42_v8  ;;  %303 = vmatpush.msra.mxu2 %v42_v8  ;;  %v33_v34 = vld [vmem:[%s511_s0 + $0x70] sm:$0xff]  ;;  %v116_v35 = vld [vmem:[%s512_s1] sm:$0xff] }
  0x13   :  { %304 = vmatpush.msra.mxu3 %v42_v8  ;;  %185 = vmatpush.msra.mxu1 %v118_v26  ;;  %v326_v52 = vld [vmem:[%s513_s2] ss:$0 sm:$0xff]  ;;  %s353_s2 = smov [#allocation2]  }
  0x14   :  { %60 = vmatpush.msra.mxu0 %v41_v9  ;;  %305 = vmatpush.msra.mxu2 %v41_v9  ;;  %s257_s7 = sshll.u32 %s353_s2, 4  ;;  %s258_s7 = int_to_ptr.vmem [resolvable:$true] %s257_s7 }
  0x15   :  { %306 = vmatpush.msra.mxu3 %v41_v9  ;;  %186 = vmatpush.msra.mxu1 %v117_v27 }
  0x16   :  { %61 = vmatpush.msra.mxu0 %v40_v10  ;;  %307 = vmatpush.msra.mxu2 %v40_v10 }
  0x17   :  { %308 = vmatpush.msra.mxu3 %v40_v10  ;;  %187 = vmatpush.msra.mxu1 %v116_v35 }
  0x18   :  { %62 = vmatpush.msra.mxu0 %v39_v11  ;;  %309 = vmatpush.msra.mxu2 %v39_v11 }
  0x19   :  { %310 = vmatpush.msra.mxu3 %v39_v11 }
  0x1a   :  { %63 = vmatpush.msra.mxu0 %v38_v12  ;;  %311 = vmatpush.msra.mxu2 %v38_v12 }
  0x1b   :  { %312 = vmatpush.msra.mxu3 %v38_v12 }
  0x1c   :  { %64 = vmatpush.msra.mxu0 %v37_v13  ;;  %313 = vmatpush.msra.mxu2 %v37_v13 }
  0x1d   :  { %314 = vmatpush.msra.mxu3 %v37_v13 }
  0x1e   :  { %65 = vmatpush.msra.mxu0 %v36_v14  ;;  %315 = vmatpush.msra.mxu2 %v36_v14 }
  0x1f   :  { %316 = vmatpush.msra.mxu3 %v36_v14 }
  0x20   :  { %66 = vmatpush.msra.mxu0 %v35_v15  ;;  %317 = vmatpush.msra.mxu2 %v35_v15 }
  0x21   :  { %67 = vmatmul.f32.vlgmr.msra.gmra.mxu0 %v19_v16  ;;  %88 = vmatmul.f32.vlgmr.msra.gmra.mxu2 %v26_v17 }
  0x22   :  { %318 = vmatpush.msra.mxu3 %v35_v15 }
  0x23   :  { %112 = vmatmul.f32.vlgmr.msra.gmra.mxu3 %v34_v24 }
  0x24   :  { %319 = vmatpush.msrb.mxu3 %v119_v25 }
  0x26   :  { %320 = vmatpush.msrb.mxu3 %v118_v26 }
  0x28   :  { %321 = vmatpush.msrb.mxu3 %v117_v27 }
  0x29   :  { %70 = vmatmul.f32.gmra.mxu0 %v20_v18  ;;  %91 = vmatmul.f32.gmra.mxu2 %v27_v19 }
  0x2a   :  { %322 = vmatpush.msrb.mxu3 %v116_v35 }
  0x31   :  { %73 = vmatmul.f32.gmra.mxu0 %v21_v20  ;;  %94 = vmatmul.f32.gmra.mxu2 %v28_v21 }
  0x39   :  { %76 = vmatmul.f32.gmra.mxu0 %v22_v22  ;;  %97 = vmatmul.f32.gmra.mxu2 %v29_v23 }
  0x41   :  { %79 = vmatmul.f32.gmra.mxu0 %v23_v28  ;;  %100 = vmatmul.f32.gmra.mxu2 %v30_v29 }
  0x49   :  { %82 = vmatmul.f32.gmra.mxu0 %v24_v30  ;;  %103 = vmatmul.f32.gmra.mxu2 %v31_v31 }
  0x51   :  { %85 = vmatmul.f32.gmra.mxu0 %v25_v32  ;;  %106 = vmatmul.f32.gmra.mxu2 %v32_v33 }
  0x59   :  { %109 = vmatmul.f32.gmra.mxu2 %v33_v34 }
  0x9e   :  { %v68_v36 = vpop.f32.mrf.mxu0 }
  0x9f   :  { %271 = vmatmul.msk.f32.vlgmr.msra.gmra.mxu1 %vm123_vm0, %v68_v36 }
  0xa4   :  { %v89_v37 = vpop.f32.mrf.mxu2 }
  0xa6   :  { %v71_v38 = vpop.f32.mrf.mxu0  ;;  %v113_v51 = vpop.f32.mrf.mxu3 }
  0xa7   :  { %272 = vmatmul.msk.f32.gmra.mxu1 %vm123_vm0, %v71_v38 }
  0xac   :  { %v92_v39 = vpop.f32.mrf.mxu2 }
  0xae   :  { %v74_v40 = vpop.f32.mrf.mxu0 }
  0xaf   :  { %273 = vmatmul.msk.f32.gmra.mxu1 %vm123_vm0, %v74_v40 }
  0xb4   :  { %v95_v41 = vpop.f32.mrf.mxu2 }
  0xb6   :  { %v77_v42 = vpop.f32.mrf.mxu0 }
  0xb7   :  { %274 = vmatmul.msk.f32.gmra.mxu1 %vm123_vm0, %v77_v42 }
  0xbc   :  { %v98_v43 = vpop.f32.mrf.mxu2 }
  0xbd   :  { %281 = vmatmul.msk.f32.vlgmr.msrb.gmra.mxu3 %vm123_vm0, %v98_v43 }
  0xbe   :  { %v80_v44 = vpop.f32.mrf.mxu0 }
  0xbf   :  { %275 = vmatmul.msk.f32.gmra.mxu1 %vm123_vm0, %v80_v44 }
  0xc4   :  { %v101_v45 = vpop.f32.mrf.mxu2 }
  0xc5   :  { %282 = vmatmul.msk.f32.gmra.mxu3 %vm123_vm0, %v101_v45 }
  0xc6   :  { %v83_v46 = vpop.f32.mrf.mxu0 }
  0xc7   :  { %276 = vmatmul.msk.f32.gmra.mxu1 %vm123_vm0, %v83_v46 }
  0xcc   :  { %v104_v47 = vpop.f32.mrf.mxu2 }
  0xcd   :  { %283 = vmatmul.msk.f32.gmra.mxu3 %vm123_vm0, %v104_v47 }
  0xce   :  { %v86_v48 = vpop.f32.mrf.mxu0 }
  0xcf   :  { %277 = vmatmul.msk.f32.gmra.mxu1 %vm123_vm0, %v86_v48 }
  0xd4   :  { %v107_v49 = vpop.f32.mrf.mxu2 }
  0xd5   :  { %284 = vmatmul.msk.f32.gmra.mxu3 %vm123_vm0, %v107_v49 }
  0xd7   :  { %278 = vmatmul.msk.f32.gmra.mxu1 %vm123_vm0, %v89_v37 }
  0xdc   :  { %v110_v50 = vpop.f32.mrf.mxu2 }
  0xdd   :  { %285 = vmatmul.msk.f32.gmra.mxu3 %vm123_vm0, %v110_v50 }
  0xdf   :  { %279 = vmatmul.msk.f32.gmra.mxu1 %vm123_vm0, %v92_v39 }
  0xe5   :  { %286 = vmatmul.msk.f32.gmra.mxu3 %vm123_vm0, %v113_v51 }
  0xe7   :  { %280 = vmatmul.msk.f32.gmra.mxu1 %vm123_vm0, %v95_v41 }
 0x11c   :  { %v189_v53 = vpop.f32.mrf.mxu1 }
 0x11d   :  { %v190_v54 = vadd.f32 %v326_v52, %v189_v53 }
 0x11f   :  { %237 = vst [vmem:[#allocation2] sm:$0xff] %v190_v54 }
 0x124   :  { %v192_v55 = vpop.f32.mrf.mxu1 }
 0x125   :  { %v193_v56 = vadd.f32 %v326_v52, %v192_v55 }
 0x127   :  { %238 = vst [vmem:[#allocation2 + $0x8] sm:$0xff] %v193_v56 }
 0x12c   :  { %v195_v57 = vpop.f32.mrf.mxu1 }
 0x12d   :  { %v196_v58 = vadd.f32 %v326_v52, %v195_v57 }
 0x12f   :  { %239 = vst [vmem:[#allocation2 + $0x10] sm:$0xff] %v196_v58 }
 0x134   :  { %v198_v59 = vpop.f32.mrf.mxu1 }
 0x135   :  { %v199_v60 = vadd.f32 %v326_v52, %v198_v59 }
 0x137   :  { %240 = vst [vmem:[#allocation2 + $0x18] sm:$0xff] %v199_v60 }
 0x13c   :  { %v201_v61 = vpop.f32.mrf.mxu1 }
 0x13d   :  { %v202_v62 = vadd.f32 %v326_v52, %v201_v61 }
 0x13f   :  { %241 = vst [vmem:[#allocation2 + $0x20] sm:$0xff] %v202_v62 }
 0x140   :  { %v219_v63 = vpop.f32.mrf.mxu3 }
 0x141   :  { %v220_v0 = vadd.f32 %v326_v52, %v219_v63 }
 0x143   :  { %247 = vst [vmem:[#allocation2 + $0x50] sm:$0xff] %v220_v0 }
 0x144   :  { %v204_v1 = vpop.f32.mrf.mxu1 }
 0x145   :  { %v205_v2 = vadd.f32 %v326_v52, %v204_v1 }
 0x147   :  { %242 = vst [vmem:[#allocation2 + $0x28] sm:$0xff] %v205_v2 }
 0x148   :  { %v222_v3 = vpop.f32.mrf.mxu3 }
 0x149   :  { %v223_v4 = vadd.f32 %v326_v52, %v222_v3 }
 0x14b   :  { %248 = vst [vmem:[#allocation2 + $0x58] sm:$0xff] %v223_v4 }
 0x14c   :  { %v207_v5 = vpop.f32.mrf.mxu1 }
 0x14d   :  { %v208_v6 = vadd.f32 %v326_v52, %v207_v5 }
 0x14f   :  { %243 = vst [vmem:[#allocation2 + $0x30] sm:$0xff] %v208_v6 }
 0x150   :  { %v225_v7 = vpop.f32.mrf.mxu3 }
 0x151   :  { %v226_v8 = vadd.f32 %v326_v52, %v225_v7 }
 0x153   :  { %249 = vst [vmem:[#allocation2 + $0x60] sm:$0xff] %v226_v8 }
 0x154   :  { %v210_v9 = vpop.f32.mrf.mxu1 }
 0x155   :  { %v211_v10 = vadd.f32 %v326_v52, %v210_v9 }
 0x157   :  { %244 = vst [vmem:[#allocation2 + $0x38] sm:$0xff] %v211_v10 }
 0x158   :  { %v228_v11 = vpop.f32.mrf.mxu3 }
 0x159   :  { %v229_v12 = vadd.f32 %v326_v52, %v228_v11 }
 0x15b   :  { %250 = vst [vmem:[#allocation2 + $0x68] sm:$0xff] %v229_v12 }
 0x15c   :  { %v213_v13 = vpop.f32.mrf.mxu1 }
 0x15d   :  { %v214_v14 = vadd.f32 %v326_v52, %v213_v13 }
 0x15f   :  { %245 = vst [vmem:[#allocation2 + $0x40] sm:$0xff] %v214_v14 }
 0x160   :  { %v231_v15 = vpop.f32.mrf.mxu3 }
 0x161   :  { %v232_v16 = vadd.f32 %v326_v52, %v231_v15 }
 0x163   :  { %251 = vst [vmem:[#allocation2 + $0x70] sm:$0xff] %v232_v16 }
 0x164   :  { %v216_v17 = vpop.f32.mrf.mxu1 }
 0x165   :  { %v217_v18 = vadd.f32 %v326_v52, %v216_v17 }
 0x167   :  { %246 = vst [vmem:[#allocation2 + $0x48] sm:$0xff] %v217_v18 }
 0x168   :  { %v234_v19 = vpop.f32.mrf.mxu3 }
 0x169   :  { %v235_v20 = vadd.f32 %v326_v52, %v234_v19 }
 0x16b   :  { %252 = vst [vmem:[#allocation2 + $0x78] sm:$0xff] %v235_v20 }
 0x16c   :  { %265 = dma.vmem_to_hbm [thread:$0]  %s258_s7, 2048, %s260_s10, [#allocation3], %s354_s11, %s354_s11, %s355_s12  }
 0x16d   :  { %351 = dma.done.wait [#allocation3], 2048  }
 0x16e   :  { %352 = vsyncadd [#allocation3], 4294965248 }
 0x16f   :  { %270 = vsyncpa [#allocation3], 1 }

// kernel: tpu_custom_call.1
= control target key start
LH: loop header
LB: loop body
LE: loop exit
PB: predicated region body
PF: predicated region fallthrough
CT: control target
= control target key end

     0   :  { %s511_s0 = inlined_call_operand.vmem [shape: f32[128,128], index: 0, kind: input, shape index: {}]   ;;  %s512_s1 = inlined_call_operand.vmem [shape: f32[32,128], index: 1, kind: input, shape index: {}]   ;;  %s513_s2 = inlined_call_operand.vmem [shape: f32[1,128], index: 2, kind: input, shape index: {}]   ;;  %s514_s3 = inlined_call_operand.vmem [shape: f32[128,32], index: 3, kind: input, shape index: {}]   ;;  %s515_s4 = inlined_call_operand.hbm [shape: f32[128,128], index: 4, kind: output, shape index: {}]  }
   0x1   :  { %v50_v0 = vld [vmem:[%s514_s3 + $0x78] sm:$0xff]  ;;  %v49_v1 = vld [vmem:[%s514_s3 + $0x70] sm:$0xff]  ;;  %v48_v2 = vld [vmem:[%s514_s3 + $0x68] sm:$0xff] }
   0x2   :  { %51 = vmatpush.msra.mxu0 %v50_v0  ;;  %287 = vmatpush.msra.mxu2 %v50_v0  ;;  %v47_v3 = vld [vmem:[%s514_s3 + $0x60] sm:$0xff]  ;;  %v46_v4 = vld [vmem:[%s514_s3 + $0x58] sm:$0xff] }
   0x3   :  { %288 = vmatpush.msra.mxu3 %v50_v0 }
   0x4   :  { %52 = vmatpush.msra.mxu0 %v49_v1  ;;  %289 = vmatpush.msra.mxu2 %v49_v1 }
   0x5   :  { %290 = vmatpush.msra.mxu3 %v49_v1 }
   0x6   :  { %53 = vmatpush.msra.mxu0 %v48_v2  ;;  %291 = vmatpush.msra.mxu2 %v48_v2 }
   0x7   :  { %292 = vmatpush.msra.mxu3 %v48_v2 }
   0x8   :  { %9 = vsyncpa [#allocation3], 0  ;;  %54 = vmatpush.msra.mxu0 %v47_v3  ;;  %293 = vmatpush.msra.mxu2 %v47_v3  ;;  %v45_v5 = vld [vmem:[%s514_s3 + $0x50] sm:$0xff]  ;;  %v44_v6 = vld [vmem:[%s514_s3 + $0x48] sm:$0xff]  ;;  %vm123_vm0 = vcmask 261120   ;;  %s259_s10 = sshll.u32 %s515_s4, 4  ;;  %s260_s10 = int_to_ptr.hbm [resolvable:$true] %s259_s10 }
   0x9   :  { %294 = vmatpush.msra.mxu3 %v47_v3  ;;  %v43_v7 = vld [vmem:[%s514_s3 + $0x40] sm:$0xff]  ;;  %v42_v8 = vld [vmem:[%s514_s3 + $0x38] sm:$0xff]  ;;  %v41_v9 = vld [vmem:[%s514_s3 + $0x30] sm:$0xff]  ;;  %s354_s11 = smov 128   ;;  %s355_s12 = smov 8  }
   0xa   :  { %55 = vmatpush.msra.mxu0 %v46_v4  ;;  %295 = vmatpush.msra.mxu2 %v46_v4  ;;  %v40_v10 = vld [vmem:[%s514_s3 + $0x28] sm:$0xff]  ;;  %v39_v11 = vld [vmem:[%s514_s3 + $0x20] sm:$0xff]  ;;  %v38_v12 = vld [vmem:[%s514_s3 + $0x18] sm:$0xff] }
   0xb   :  { %296 = vmatpush.msra.mxu3 %v46_v4  ;;  %v37_v13 = vld [vmem:[%s514_s3 + $0x10] sm:$0xff]  ;;  %v36_v14 = vld [vmem:[%s514_s3 + $0x8] sm:$0xff]  ;;  %v35_v15 = vld [vmem:[%s514_s3] sm:$0xff] }
   0xc   :  { %56 = vmatpush.msra.mxu0 %v45_v5  ;;  %297 = vmatpush.msra.mxu2 %v45_v5  ;;  %v19_v16 = vld [vmem:[%s511_s0] sm:$0xff]  ;;  %v26_v17 = vld [vmem:[%s511_s0 + $0x38] sm:$0xff]  ;;  %v20_v18 = vld [vmem:[%s511_s0 + $0x8] sm:$0xff] }
   0xd   :  { %298 = vmatpush.msra.mxu3 %v45_v5  ;;  %v27_v19 = vld [vmem:[%s511_s0 + $0x40] sm:$0xff]  ;;  %v21_v20 = vld [vmem:[%s511_s0 + $0x10] sm:$0xff]  ;;  %v28_v21 = vld [vmem:[%s511_s0 + $0x48] sm:$0xff] }
   0xe   :  { %57 = vmatpush.msra.mxu0 %v44_v6  ;;  %299 = vmatpush.msra.mxu2 %v44_v6  ;;  %v22_v22 = vld [vmem:[%s511_s0 + $0x18] sm:$0xff]  ;;  %v29_v23 = vld [vmem:[%s511_s0 + $0x50] sm:$0xff]  ;;  %v117_v27 = vld [vmem:[%s512_s1 + $0x8] sm:$0xff] }
   0xf   :  { %300 = vmatpush.msra.mxu3 %v44_v6  ;;  %v34_v24 = vld [vmem:[%s511_s0 + $0x78] sm:$0xff]  ;;  %v118_v26 = vld [vmem:[%s512_s1 + $0x10] sm:$0xff]  ;;  %v23_v28 = vld [vmem:[%s511_s0 + $0x20] sm:$0xff] }
  0x10   :  { %58 = vmatpush.msra.mxu0 %v43_v7  ;;  %301 = vmatpush.msra.mxu2 %v43_v7  ;;  %v119_v25 = vld [vmem:[%s512_s1 + $0x18] sm:$0xff]  ;;  %v24_v30 = vld [vmem:[%s511_s0 + $0x28] sm:$0xff]  ;;  %v31_v31 = vld [vmem:[%s511_s0 + $0x60] sm:$0xff] }
  0x11   :  { %302 = vmatpush.msra.mxu3 %v43_v7  ;;  %184 = vmatpush.msra.mxu1 %v119_v25  ;;  %v30_v29 = vld [vmem:[%s511_s0 + $0x58] sm:$0xff]  ;;  %v25_v32 = vld [vmem:[%s511_s0 + $0x30] sm:$0xff]  ;;  %v32_v33 = vld [vmem:[%s511_s0 + $0x68] sm:$0xff] }
  0x12   :  { %59 = vmatpush.msra.mxu0 %v42_v8  ;;  %303 = vmatpush.msra.mxu2 %v42_v8  ;;  %v33_v34 = vld [vmem:[%s511_s0 + $0x70] sm:$0xff]  ;;  %v116_v35 = vld [vmem:[%s512_s1] sm:$0xff] }
  0x13   :  { %304 = vmatpush.msra.mxu3 %v42_v8  ;;  %185 = vmatpush.msra.mxu1 %v118_v26  ;;  %v326_v52 = vld [vmem:[%s513_s2] ss:$0 sm:$0xff]  ;;  %s353_s2 = smov [#allocation2]  }
  0x14   :  { %60 = vmatpush.msra.mxu0 %v41_v9  ;;  %305 = vmatpush.msra.mxu2 %v41_v9  ;;  %s257_s7 = sshll.u32 %s353_s2, 4  ;;  %s258_s7 = int_to_ptr.vmem [resolvable:$true] %s257_s7 }
  0x15   :  { %306 = vmatpush.msra.mxu3 %v41_v9  ;;  %186 = vmatpush.msra.mxu1 %v117_v27 }
  0x16   :  { %61 = vmatpush.msra.mxu0 %v40_v10  ;;  %307 = vmatpush.msra.mxu2 %v40_v10 }
  0x17   :  { %308 = vmatpush.msra.mxu3 %v40_v10  ;;  %187 = vmatpush.msra.mxu1 %v116_v35 }
  0x18   :  { %62 = vmatpush.msra.mxu0 %v39_v11  ;;  %309 = vmatpush.msra.mxu2 %v39_v11 }
  0x19   :  { %310 = vmatpush.msra.mxu3 %v39_v11 }
  0x1a   :  { %63 = vmatpush.msra.mxu0 %v38_v12  ;;  %311 = vmatpush.msra.mxu2 %v38_v12 }
  0x1b   :  { %312 = vmatpush.msra.mxu3 %v38_v12 }
  0x1c   :  { %64 = vmatpush.msra.mxu0 %v37_v13  ;;  %313 = vmatpush.msra.mxu2 %v37_v13 }
  0x1d   :  { %314 = vmatpush.msra.mxu3 %v37_v13 }
  0x1e   :  { %65 = vmatpush.msra.mxu0 %v36_v14  ;;  %315 = vmatpush.msra.mxu2 %v36_v14 }
  0x1f   :  { %316 = vmatpush.msra.mxu3 %v36_v14 }
  0x20   :  { %66 = vmatpush.msra.mxu0 %v35_v15  ;;  %317 = vmatpush.msra.mxu2 %v35_v15 }
  0x21   :  { %67 = vmatmul.f32.vlgmr.msra.gmra.mxu0 %v19_v16  ;;  %88 = vmatmul.f32.vlgmr.msra.gmra.mxu2 %v26_v17 }
  0x22   :  { %318 = vmatpush.msra.mxu3 %v35_v15 }
  0x23   :  { %112 = vmatmul.f32.vlgmr.msra.gmra.mxu3 %v34_v24 }
  0x24   :  { %319 = vmatpush.msrb.mxu3 %v119_v25 }
  0x26   :  { %320 = vmatpush.msrb.mxu3 %v118_v26 }
  0x28   :  { %321 = vmatpush.msrb.mxu3 %v117_v27 }
  0x29   :  { %70 = vmatmul.f32.gmra.mxu0 %v20_v18  ;;  %91 = vmatmul.f32.gmra.mxu2 %v27_v19 }
  0x2a   :  { %322 = vmatpush.msrb.mxu3 %v116_v35 }
  0x31   :  { %73 = vmatmul.f32.gmra.mxu0 %v21_v20  ;;  %94 = vmatmul.f32.gmra.mxu2 %v28_v21 }
  0x39   :  { %76 = vmatmul.f32.gmra.mxu0 %v22_v22  ;;  %97 = vmatmul.f32.gmra.mxu2 %v29_v23 }
  0x41   :  { %79 = vmatmul.f32.gmra.mxu0 %v23_v28  ;;  %100 = vmatmul.f32.gmra.mxu2 %v30_v29 }
  0x49   :  { %82 = vmatmul.f32.gmra.mxu0 %v24_v30  ;;  %103 = vmatmul.f32.gmra.mxu2 %v31_v31 }
  0x51   :  { %85 = vmatmul.f32.gmra.mxu0 %v25_v32  ;;  %106 = vmatmul.f32.gmra.mxu2 %v32_v33 }
  0x59   :  { %109 = vmatmul.f32.gmra.mxu2 %v33_v34 }
  0x9e   :  { %v68_v36 = vpop.f32.mrf.mxu0 }
  0x9f   :  { %271 = vmatmul.msk.f32.vlgmr.msra.gmra.mxu1 %vm123_vm0, %v68_v36 }
  0xa4   :  { %v89_v37 = vpop.f32.mrf.mxu2 }
  0xa6   :  { %v71_v38 = vpop.f32.mrf.mxu0  ;;  %v113_v51 = vpop.f32.mrf.mxu3 }
  0xa7   :  { %272 = vmatmul.msk.f32.gmra.mxu1 %vm123_vm0, %v71_v38 }
  0xac   :  { %v92_v39 = vpop.f32.mrf.mxu2 }
  0xae   :  { %v74_v40 = vpop.f32.mrf.mxu0 }
  0xaf   :  { %273 = vmatmul.msk.f32.gmra.mxu1 %vm123_vm0, %v74_v40 }
  0xb4   :  { %v95_v41 = vpop.f32.mrf.mxu2 }
  0xb6   :  { %v77_v42 = vpop.f32.mrf.mxu0 }
  0xb7   :  { %274 = vmatmul.msk.f32.gmra.mxu1 %vm123_vm0, %v77_v42 }
  0xbc   :  { %v98_v43 = vpop.f32.mrf.mxu2 }
  0xbd   :  { %281 = vmatmul.msk.f32.vlgmr.msrb.gmra.mxu3 %vm123_vm0, %v98_v43 }
  0xbe   :  { %v80_v44 = vpop.f32.mrf.mxu0 }
  0xbf   :  { %275 = vmatmul.msk.f32.gmra.mxu1 %vm123_vm0, %v80_v44 }
  0xc4   :  { %v101_v45 = vpop.f32.mrf.mxu2 }
  0xc5   :  { %282 = vmatmul.msk.f32.gmra.mxu3 %vm123_vm0, %v101_v45 }
  0xc6   :  { %v83_v46 = vpop.f32.mrf.mxu0 }
  0xc7   :  { %276 = vmatmul.msk.f32.gmra.mxu1 %vm123_vm0, %v83_v46 }
  0xcc   :  { %v104_v47 = vpop.f32.mrf.mxu2 }
  0xcd   :  { %283 = vmatmul.msk.f32.gmra.mxu3 %vm123_vm0, %v104_v47 }
  0xce   :  { %v86_v48 = vpop.f32.mrf.mxu0 }
  0xcf   :  { %277 = vmatmul.msk.f32.gmra.mxu1 %vm123_vm0, %v86_v48 }
  0xd4   :  { %v107_v49 = vpop.f32.mrf.mxu2 }
  0xd5   :  { %284 = vmatmul.msk.f32.gmra.mxu3 %vm123_vm0, %v107_v49 }
  0xd7   :  { %278 = vmatmul.msk.f32.gmra.mxu1 %vm123_vm0, %v89_v37 }
  0xdc   :  { %v110_v50 = vpop.f32.mrf.mxu2 }
  0xdd   :  { %285 = vmatmul.msk.f32.gmra.mxu3 %vm123_vm0, %v110_v50 }
  0xdf   :  { %279 = vmatmul.msk.f32.gmra.mxu1 %vm123_vm0, %v92_v39 }
  0xe5   :  { %286 = vmatmul.msk.f32.gmra.mxu3 %vm123_vm0, %v113_v51 }
  0xe7   :  { %280 = vmatmul.msk.f32.gmra.mxu1 %vm123_vm0, %v95_v41 }
 0x11c   :  { %v189_v53 = vpop.f32.mrf.mxu1 }
 0x11d   :  { %v190_v54 = vadd.f32 %v326_v52, %v189_v53 }
 0x11f   :  { %237 = vst [vmem:[#allocation2] sm:$0xff] %v190_v54 }
 0x124   :  { %v192_v55 = vpop.f32.mrf.mxu1 }
 0x125   :  { %v193_v56 = vadd.f32 %v326_v52, %v192_v55 }
 0x127   :  { %238 = vst [vmem:[#allocation2 + $0x8] sm:$0xff] %v193_v56 }
 0x12c   :  { %v195_v57 = vpop.f32.mrf.mxu1 }
 0x12d   :  { %v196_v58 = vadd.f32 %v326_v52, %v195_v57 }
 0x12f   :  { %239 = vst [vmem:[#allocation2 + $0x10] sm:$0xff] %v196_v58 }
 0x134   :  { %v198_v59 = vpop.f32.mrf.mxu1 }
 0x135   :  { %v199_v60 = vadd.f32 %v326_v52, %v198_v59 }
 0x137   :  { %240 = vst [vmem:[#allocation2 + $0x18] sm:$0xff] %v199_v60 }
 0x13c   :  { %v201_v61 = vpop.f32.mrf.mxu1 }
 0x13d   :  { %v202_v62 = vadd.f32 %v326_v52, %v201_v61 }
 0x13f   :  { %241 = vst [vmem:[#allocation2 + $0x20] sm:$0xff] %v202_v62 }
 0x140   :  { %v219_v63 = vpop.f32.mrf.mxu3 }
 0x141   :  { %v220_v0 = vadd.f32 %v326_v52, %v219_v63 }
 0x143   :  { %247 = vst [vmem:[#allocation2 + $0x50] sm:$0xff] %v220_v0 }
 0x144   :  { %v204_v1 = vpop.f32.mrf.mxu1 }
 0x145   :  { %v205_v2 = vadd.f32 %v326_v52, %v204_v1 }
 0x147   :  { %242 = vst [vmem:[#allocation2 + $0x28] sm:$0xff] %v205_v2 }
 0x148   :  { %v222_v3 = vpop.f32.mrf.mxu3 }
 0x149   :  { %v223_v4 = vadd.f32 %v326_v52, %v222_v3 }
 0x14b   :  { %248 = vst [vmem:[#allocation2 + $0x58] sm:$0xff] %v223_v4 }
 0x14c   :  { %v207_v5 = vpop.f32.mrf.mxu1 }
 0x14d   :  { %v208_v6 = vadd.f32 %v326_v52, %v207_v5 }
 0x14f   :  { %243 = vst [vmem:[#allocation2 + $0x30] sm:$0xff] %v208_v6 }
 0x150   :  { %v225_v7 = vpop.f32.mrf.mxu3 }
 0x151   :  { %v226_v8 = vadd.f32 %v326_v52, %v225_v7 }
 0x153   :  { %249 = vst [vmem:[#allocation2 + $0x60] sm:$0xff] %v226_v8 }
 0x154   :  { %v210_v9 = vpop.f32.mrf.mxu1 }
 0x155   :  { %v211_v10 = vadd.f32 %v326_v52, %v210_v9 }
 0x157   :  { %244 = vst [vmem:[#allocation2 + $0x38] sm:$0xff] %v211_v10 }
 0x158   :  { %v228_v11 = vpop.f32.mrf.mxu3 }
 0x159   :  { %v229_v12 = vadd.f32 %v326_v52, %v228_v11 }
 0x15b   :  { %250 = vst [vmem:[#allocation2 + $0x68] sm:$0xff] %v229_v12 }
 0x15c   :  { %v213_v13 = vpop.f32.mrf.mxu1 }
 0x15d   :  { %v214_v14 = vadd.f32 %v326_v52, %v213_v13 }
 0x15f   :  { %245 = vst [vmem:[#allocation2 + $0x40] sm:$0xff] %v214_v14 }
 0x160   :  { %v231_v15 = vpop.f32.mrf.mxu3 }
 0x161   :  { %v232_v16 = vadd.f32 %v326_v52, %v231_v15 }
 0x163   :  { %251 = vst [vmem:[#allocation2 + $0x70] sm:$0xff] %v232_v16 }
 0x164   :  { %v216_v17 = vpop.f32.mrf.mxu1 }
 0x165   :  { %v217_v18 = vadd.f32 %v326_v52, %v216_v17 }
 0x167   :  { %246 = vst [vmem:[#allocation2 + $0x48] sm:$0xff] %v217_v18 }
 0x168   :  { %v234_v19 = vpop.f32.mrf.mxu3 }
 0x169   :  { %v235_v20 = vadd.f32 %v326_v52, %v234_v19 }
 0x16b   :  { %252 = vst [vmem:[#allocation2 + $0x78] sm:$0xff] %v235_v20 }
 0x16c   :  { %265 = dma.vmem_to_hbm [thread:$0]  %s258_s7, 2048, %s260_s10, [#allocation3], %s354_s11, %s354_s11, %s355_s12  }
 0x16d   :  { %351 = dma.done.wait [#allocation3], 2048  }
 0x16e   :  { %352 = vsyncadd [#allocation3], 4294965248 }
 0x16f   :  { %270 = vsyncpa [#allocation3], 1 }

</bundles_post_ra>
